<compile_context>
chip_gen: v7x
topology: tpu7x:2x2x1
jax: 0.10.0
libtpu: 0.0.40
codegen_flags: <defaults>
</compile_context>

<pallas_src>
import jax
import jax.numpy as jnp
from jax.experimental import pallas as pl
from jax.experimental.pallas import tpu as pltpu


_VMEM_LIMIT_BYTES = 32 * 1024 * 1024   # explicit scoped-VMEM limit: safe on v5e/v6e/v7x
_VMEM_BLOCK_BUDGET = 24 * 1024 * 1024  # target working set (2x in + 2x out + f32 temps)


# --------------------------------------------------------------------------
# Kernels
# --------------------------------------------------------------------------
def _single_pass_kernel(eps: float, gamma: float, n_red: int):
    """Whole spatial extent (L) resident in the block: exact two-pass variance."""
    inv_n = 1.0 / float(n_red)
    inv_nm1 = 1.0 / float(max(n_red - 1, 1))   # unbiased; guard n_red == 1

    def kernel(x_ref, o_ref):
        # x_ref: (1, L, Ct); reduce over axis 1 (sublanes), channels on lanes.
        xf = x_ref[...].astype(jnp.float32)
        mean = jnp.sum(xf, axis=1, keepdims=True) * inv_n
        diff = xf - mean
        var = jnp.sum(diff * diff, axis=1, keepdims=True) * inv_nm1
        scale = jax.lax.rsqrt(var + eps) * gamma
        o_ref[...] = (diff * scale).astype(o_ref.dtype)

    return kernel


def _stats_kernel(n_red: int, l_tile: int):
    """Fallback pass 1: accumulate per-channel sum / sum-of-squares over L tiles."""

    def kernel(x_ref, sum_ref, ss_ref):
        l = pl.program_id(2)

        @pl.when(l == 0)
        def _():
            sum_ref[...] = jnp.zeros_like(sum_ref)
            ss_ref[...] = jnp.zeros_like(ss_ref)

        xf = x_ref[...].astype(jnp.float32)                  # (1, Lt, Ct)
        if n_red % l_tile != 0:
            # Ragged last L tile: zero out padded sublanes so they do not
            # contaminate the per-channel (per-lane) reduction.
            row = jax.lax.broadcasted_iota(jnp.int32, xf.shape, 1)
            xf = jnp.where(l * l_tile + row < n_red, xf, 0.0)
        sum_ref[...] += jnp.sum(xf, axis=1, keepdims=True)
        ss_ref[...] += jnp.sum(xf * xf, axis=1, keepdims=True)

    return kernel


def _normalize_kernel(x_ref, scale_ref, shift_ref, o_ref):
    """Fallback pass 2: fused x * scale - shift, f32 math, cast on store."""
    xf = x_ref[...].astype(jnp.float32)
    o_ref[...] = (xf * scale_ref[...] - shift_ref[...]).astype(o_ref.dtype)


# --------------------------------------------------------------------------
# Wrapper
# --------------------------------------------------------------------------
def adain_pallas(x: jax.Array, eps: float = 1e-5, gamma: float = 0.5,
                 *, _max_block_elems: int | None = None) -> jax.Array:
    """adaIN forward. x: 4-D array, reduction over axes (1, 2). Same shape/dtype out."""
    if x.ndim != 4:
        raise ValueError(f"expected 4-D input, got shape {x.shape}")
    A, R1, R2, C = x.shape
    L = R1 * R2

    # Free contiguous merge of the two reduced dims; no transpose, no pad.
    x3 = x.reshape(A, L, C)

    itemsize = x.dtype.itemsize
    # Per-element VMEM estimate: double-buffered in + out (input dtype) plus
    # ~3 f32 temporaries inside the kernel.
    max_elems = _VMEM_BLOCK_BUDGET // (4 * itemsize + 12)
    if _max_block_elems is not None:
        max_elems = _max_block_elems

    # Pick the channel tile (lane axis): full C, or a multiple of 128.
    if L * C <= max_elems:
        Ct, single = C, True
    elif C > 128 and L * 128 <= max_elems:
        Ct, single = (max_elems // L) // 128 * 128, True
    else:
        Ct, single = (C if C <= 128 else 128), False
    c_tiles = pl.cdiv(C, Ct)

    if single:
        # One pass: full spatial extent resident per block; grid over
        # (batch, channel-tile), every step independent ("parallel").
        # TODO(synk): on v7x, splitting to >=4 total grid steps (when blocks are
        # far below budget) would keep both TensorCores' DMA pipelines fuller.
        out3 = pl.pallas_call(
            _single_pass_kernel(eps, gamma, L),
            out_shape=jax.ShapeDtypeStruct((A, L, C), x.dtype),
            grid_spec=pl.GridSpec(
                grid=(A, c_tiles),
                in_specs=[pl.BlockSpec((1, L, Ct), lambda a, c: (a, 0, c))],
                out_specs=pl.BlockSpec((1, L, Ct), lambda a, c: (a, 0, c)),
            ),
            compiler_params=pltpu.CompilerParams(
                dimension_semantics=("parallel", "parallel"),
                vmem_limit_bytes=_VMEM_LIMIT_BYTES,
            ),
            cost_estimate=pl.CostEstimate(
                flops=6 * A * L * C,
                transcendentals=A * C,
                bytes_accessed=2 * A * L * C * itemsize,
            ),
        )(x3)
        return out3.reshape(A, R1, R2, C)

    # ---- Two-pass fallback for spatial extents too large for one block ----
    Lt = max(8, (max_elems // Ct) // 8 * 8)
    Lt = min(Lt, max(8, L // 8 * 8))
    l_tiles = pl.cdiv(L, Lt)

    s, ss = pl.pallas_call(
        _stats_kernel(L, Lt),
        out_shape=(jax.ShapeDtypeStruct((A, 1, C), jnp.float32),
                   jax.ShapeDtypeStruct((A, 1, C), jnp.float32)),
        grid_spec=pl.GridSpec(
            grid=(A, c_tiles, l_tiles),
            in_specs=[pl.BlockSpec((1, Lt, Ct), lambda a, c, l: (a, l, c))],
            out_specs=(pl.BlockSpec((1, 1, Ct), lambda a, c, l: (a, 0, c)),
                       pl.BlockSpec((1, 1, Ct), lambda a, c, l: (a, 0, c))),
        ),
        compiler_params=pltpu.CompilerParams(
            dimension_semantics=("parallel", "parallel", "arbitrary"),
            vmem_limit_bytes=_VMEM_LIMIT_BYTES,
        ),
        cost_estimate=pl.CostEstimate(
            flops=3 * A * L * C,
            transcendentals=0,
            bytes_accessed=A * L * C * itemsize,
        ),
    )(x3)

    # Tiny (A, 1, C) scalar math stays in plain JAX.
    inv_nm1 = 1.0 / float(max(L - 1, 1))
    mean = s * (1.0 / float(L))
    var = jnp.maximum((ss - float(L) * mean * mean) * inv_nm1, 0.0)
    scale = jax.lax.rsqrt(var + eps) * gamma
    shift = mean * scale

    out3 = pl.pallas_call(
        _normalize_kernel,
        out_shape=jax.ShapeDtypeStruct((A, L, C), x.dtype),
        grid_spec=pl.GridSpec(
            grid=(A, c_tiles, l_tiles),
            in_specs=[pl.BlockSpec((1, Lt, Ct), lambda a, c, l: (a, l, c)),
                      pl.BlockSpec((1, 1, Ct), lambda a, c, l: (a, 0, c)),
                      pl.BlockSpec((1, 1, Ct), lambda a, c, l: (a, 0, c))],
            out_specs=pl.BlockSpec((1, Lt, Ct), lambda a, c, l: (a, l, c)),
        ),
        compiler_params=pltpu.CompilerParams(
            dimension_semantics=("parallel", "parallel", "parallel"),
            vmem_limit_bytes=_VMEM_LIMIT_BYTES,
        ),
        cost_estimate=pl.CostEstimate(
            flops=2 * A * L * C,
            transcendentals=0,
            bytes_accessed=2 * A * L * C * itemsize,
        ),
    )(x3, scale, shift)
    return out3.reshape(A, R1, R2, C)


# --------------------------------------------------------------------------
# Pure-JAX reference (matches torch.mean / torch.var(unbiased) semantics)
# --------------------------------------------------------------------------
def adain_reference(x: jax.Array, eps: float = 1e-5, gamma: float = 0.5) -> jax.Array:
    xf = x.astype(jnp.float32)
    mean = jnp.mean(xf, axis=(1, 2), keepdims=True)
    n = x.shape[1] * x.shape[2]
    var = jnp.sum((xf - mean) ** 2, axis=(1, 2), keepdims=True) / max(n - 1, 1)
    out = (xf - mean) / jnp.sqrt(var + eps) * gamma
    return out.astype(x.dtype)


if __name__ == "__main__":
    key = jax.random.PRNGKey(0)
    # 4-D input, reduction over axes (1, 2): batch=2, spatial=16x16, channels=4
    x = jax.random.normal(key, (2, 16, 16, 4), dtype=jnp.float32)
    ref = adain_reference(x, eps=1e-5, gamma=0.5)

    # Main (single-pass) path.
    out = jax.block_until_ready(adain_pallas(x, eps=1e-5, gamma=0.5))
    assert out.shape == x.shape and out.dtype == x.dtype
    err = float(jnp.max(jnp.abs(out.astype(jnp.float32) - ref.astype(jnp.float32))))
    assert err < 1e-4, f"single-pass max abs err = {err}"

    # Exercise the large-spatial two-pass fallback by forcing a tiny block budget
    # (also covers the ragged-L masking path: 256 % 48 != 0).
    out2 = jax.block_until_ready(adain_pallas(x, eps=1e-5, gamma=0.5,
                                              _max_block_elems=200))
    err2 = float(jnp.max(jnp.abs(out2.astype(jnp.float32) - ref.astype(jnp.float32))))
    assert err2 < 1e-4, f"two-pass max abs err = {err2}"

    print("KERNEL_OK")
</pallas_src>

<mosaic_0001>
module attributes {stable_mosaic.version = 11 : i64} {
  func.func @kernel(%arg0: i32, %arg1: i32, %arg2: memref<1x256x4xf32, #tpu.memory_space<vmem>>, %arg3: memref<1x256x4xf32, #tpu.memory_space<vmem>>) attributes {dimension_semantics = [#tpu.dimension_semantics<parallel>, #tpu.dimension_semantics<parallel>], iteration_bounds = array<i64: 2, 1>, scalar_prefetch = 0 : i64, scratch_operands = 0 : i64, tpu.core_type = #tpu.core_type<tc>, window_params = [{transform_indices = @transform_0, window_bounds = array<i64: 1, 256, 4>}, {transform_indices = @transform_1, window_bounds = array<i64: 1, 256, 4>}]} {
    %c0 = arith.constant 0 : index
    %c0_0 = arith.constant 0 : index
    %c0_1 = arith.constant 0 : index
    %0 = vector.load %arg2[%c0, %c0_0, %c0_1] : memref<1x256x4xf32, #tpu.memory_space<vmem>>, vector<1x256x4xf32>
    %cst = arith.constant dense<0.000000e+00> : vector<1x4xf32>
    %1 = vector.multi_reduction <add>, %0, %cst [1] : vector<1x256x4xf32> to vector<1x4xf32>
    %2 = vector.shape_cast %1 : vector<1x4xf32> to vector<1x1x4xf32>
    %cst_2 = arith.constant 3.906250e-03 : f32
    %3 = vector.broadcast %cst_2 : f32 to vector<1x1x4xf32>
    %4 = arith.mulf %2, %3 : vector<1x1x4xf32>
    %5 = vector.broadcast %4 : vector<1x1x4xf32> to vector<1x256x4xf32>
    %6 = arith.subf %0, %5 : vector<1x256x4xf32>
    %7 = arith.mulf %6, %6 : vector<1x256x4xf32>
    %cst_3 = arith.constant dense<0.000000e+00> : vector<1x4xf32>
    %8 = vector.multi_reduction <add>, %7, %cst_3 [1] : vector<1x256x4xf32> to vector<1x4xf32>
    %9 = vector.shape_cast %8 : vector<1x4xf32> to vector<1x1x4xf32>
    %cst_4 = arith.constant 0.00392156886 : f32
    %10 = vector.broadcast %cst_4 : f32 to vector<1x1x4xf32>
    %11 = arith.mulf %9, %10 : vector<1x1x4xf32>
    %cst_5 = arith.constant 9.99999974E-6 : f32
    %12 = vector.broadcast %cst_5 : f32 to vector<1x1x4xf32>
    %13 = arith.addf %11, %12 : vector<1x1x4xf32>
    %14 = math.rsqrt %13 : vector<1x1x4xf32>
    %cst_6 = arith.constant 5.000000e-01 : f32
    %15 = vector.broadcast %cst_6 : f32 to vector<1x1x4xf32>
    %16 = arith.mulf %14, %15 : vector<1x1x4xf32>
    %17 = vector.broadcast %16 : vector<1x1x4xf32> to vector<1x256x4xf32>
    %18 = arith.mulf %6, %17 : vector<1x256x4xf32>
    %c0_7 = arith.constant 0 : index
    %c0_8 = arith.constant 0 : index
    %c0_9 = arith.constant 0 : index
    %19 = vector.load %arg3[%c0_7, %c0_8, %c0_9] : memref<1x256x4xf32, #tpu.memory_space<vmem>>, vector<1x256x4xf32>
    tpu.vector_store %arg3[%c0_7, %c0_8, %c0_9], %18 {strides = array<i32>} : memref<1x256x4xf32, #tpu.memory_space<vmem>>, vector<1x256x4xf32>,
    return
  }
  func.func @transform_0(%arg0: i32, %arg1: i32) -> (i32, i32, i32) {
    %c0_i32 = arith.constant 0 : i32
    %c0_i32_0 = arith.constant 0 : i32
    return %arg0, %c0_i32, %arg1 : i32, i32, i32
  }
  func.func @transform_1(%arg0: i32, %arg1: i32) -> (i32, i32, i32) {
    %c0_i32 = arith.constant 0 : i32
    %c0_i32_0 = arith.constant 0 : i32
    return %arg0, %c0_i32, %arg1 : i32, i32, i32
  }
}

</mosaic_0001>

<bundles_post_ra>
// kernel: tpu_custom_call.1
= control target key start
LH: loop header
LB: loop body
LE: loop exit
PB: predicated region body
PF: predicated region fallthrough
CT: control target
= control target key end

     0   :  { %s608_s6 = smov 0   ;;  %s610_s7 = smov 0   ;;  %s1134_s0 = inlined_call_operand.vmem [shape: f32[2,256,4], index: 0, kind: input, shape index: {}]   ;;  %s1135_s1 = inlined_call_operand.vmem [shape: f32[2,256,4], index: 1, kind: output, shape index: {}]  }
   0x1   :  { %s612_s8 = smov 0  }
   0x2 LB: > { %s23_s9 = sadd.s32 1, %s592_s7  ;;  %p539_p0 = scmp.ge.s32.totalorder %s596_s8, 1  ;;  %s596_s8 = sphi %s612_s8, %s11_s8   ;;  %s592_s7 = sphi %s610_s7, %s1137_s7   ;;  %s588_s6 = sphi %s608_s6, %s1136_s6  }
   0x3   : > { %p25_p1 = scmp.ge.s32.totalorder %s23_s9, 2  ;;  %p106_p2 = scmp.lt.s32.totalorder %s596_s8, 3 }
   0x5   : > { %s1139_s9 = smov (%p25_p1, %s23_s9), 0  ;;  %p107_p3 = pnand %p539_p0, %p106_p2 }
   0x6   : > { %p132_p4 = scmp.lt.s32.totalorder (!%p107_p3), %s588_s6, 1  ;;  %vm180_vm0 = vcmask (!%p107_p3), 31744  }
   0x7   : > { %110 = sbr.rel (%p107_p3) target bundleno = 209 (0xd1), region = 24 }
   0xe   : > { %s1141_s6 = smov (!%p132_p4, %s588_s6), 1 }
   0xf   : > { %s546_s10 = sshll.u32 %s1141_s6, 8 }
  0x10   : > { %s634_s13 = scalar_lea.vmem %s1134_s0, %s546_s10  ;;  %s1027_s16 = scalar_lea.vmem %s1135_s1, %s546_s10 }
  0x11   : > { %v637_v0 = vld [vmem:[%s634_s13] sm:$0xff]  ;;  %v640_v1 = vld [vmem:[%s634_s13 + $0x8] sm:$0xff]  ;;  %v643_v2 = vld [vmem:[%s634_s13 + $0x10] sm:$0xff] }
  0x12   : > { %v646_v3 = vld [vmem:[%s634_s13 + $0x18] sm:$0xff]  ;;  %v181_v4 = vsel %vm180_vm0, %v637_v0, 0.0  ;;  %v182_v5 = vsel %vm180_vm0, %v640_v1, 0.0  ;;  %v184_v6 = vsel %vm180_vm0, %v643_v2, 0.0  ;;  %v655_v7 = vld [vmem:[%s634_s13 + $0x20] sm:$0xff]  ;;  %v660_v10 = vld [vmem:[%s634_s13 + $0x28] sm:$0xff] }
  0x13   : > { %v183_v8 = vadd.f32 %v182_v5, %v181_v4  ;;  %v186_v9 = vsel %vm180_vm0, %v646_v3, 0.0  ;;  %v188_v12 = vsel %vm180_vm0, %v655_v7, 0.0  ;;  %v665_v13 = vld [vmem:[%s634_s13 + $0x30] sm:$0xff]  ;;  %v190_v15 = vsel %vm180_vm0, %v660_v10, 0.0  ;;  %v670_v16 = vld [vmem:[%s634_s13 + $0x38] sm:$0xff]  ;;  %v675_v19 = vld [vmem:[%s634_s13 + $0x40] sm:$0xff] }
  0x14   : > { %v192_v18 = vsel %vm180_vm0, %v665_v13, 0.0  ;;  %v194_v21 = vsel %vm180_vm0, %v670_v16, 0.0  ;;  %v680_v22 = vld [vmem:[%s634_s13 + $0x48] sm:$0xff]  ;;  %v196_v24 = vsel %vm180_vm0, %v675_v19, 0.0  ;;  %v685_v25 = vld [vmem:[%s634_s13 + $0x50] sm:$0xff]  ;;  %v690_v28 = vld [vmem:[%s634_s13 + $0x58] sm:$0xff] }
  0x15   : > { %v185_v11 = vadd.f32 %v184_v6, %v183_v8  ;;  %v198_v27 = vsel %vm180_vm0, %v680_v22, 0.0  ;;  %v200_v30 = vsel %vm180_vm0, %v685_v25, 0.0  ;;  %v695_v31 = vld [vmem:[%s634_s13 + $0x60] sm:$0xff]  ;;  %v202_v33 = vsel %vm180_vm0, %v690_v28, 0.0  ;;  %v700_v34 = vld [vmem:[%s634_s13 + $0x68] sm:$0xff]  ;;  %v705_v37 = vld [vmem:[%s634_s13 + $0x70] sm:$0xff] }
  0x16   : > { %v204_v36 = vsel %vm180_vm0, %v695_v31, 0.0  ;;  %v206_v39 = vsel %vm180_vm0, %v700_v34, 0.0  ;;  %v710_v40 = vld [vmem:[%s634_s13 + $0x78] sm:$0xff]  ;;  %v208_v42 = vsel %vm180_vm0, %v705_v37, 0.0  ;;  %v715_v43 = vld [vmem:[%s634_s13 + $0x80] sm:$0xff]  ;;  %v720_v46 = vld [vmem:[%s634_s13 + $0x88] sm:$0xff] }
  0x17   : > { %v187_v14 = vadd.f32 %v186_v9, %v185_v11  ;;  %v210_v45 = vsel %vm180_vm0, %v710_v40, 0.0  ;;  %v212_v48 = vsel %vm180_vm0, %v715_v43, 0.0  ;;  %v725_v49 = vld [vmem:[%s634_s13 + $0x90] sm:$0xff]  ;;  %v214_v51 = vsel %vm180_vm0, %v720_v46, 0.0  ;;  %v730_v52 = vld [vmem:[%s634_s13 + $0x98] sm:$0xff]  ;;  %v735_v55 = vld [vmem:[%s634_s13 + $0xa0] sm:$0xff] }
  0x18   : > { %v216_v54 = vsel %vm180_vm0, %v725_v49, 0.0  ;;  %v218_v57 = vsel %vm180_vm0, %v730_v52, 0.0  ;;  %v740_v58 = vld [vmem:[%s634_s13 + $0xa8] sm:$0xff]  ;;  %v220_v60 = vsel %vm180_vm0, %v735_v55, 0.0  ;;  %v745_v61 = vld [vmem:[%s634_s13 + $0xb0] sm:$0xff]  ;;  %v750_v4 = vld [vmem:[%s634_s13 + $0xb8] sm:$0xff] }
  0x19   : > { %v189_v17 = vadd.f32 %v188_v12, %v187_v14  ;;  %v222_v63 = vsel %vm180_vm0, %v740_v58, 0.0  ;;  %v224_v6 = vsel %vm180_vm0, %v745_v61, 0.0  ;;  %v755_v8 = vld [vmem:[%s634_s13 + $0xc0] sm:$0xff]  ;;  %v226_v11 = vsel %vm180_vm0, %v750_v4, 0.0  ;;  %v760_v12 = vld [vmem:[%s634_s13 + $0xc8] sm:$0xff] }
  0x1b   : > { %v191_v20 = vadd.f32 %v190_v15, %v189_v17  ;;  %v228_v15 = vsel %vm180_vm0, %v755_v8, 0.0  ;;  %v765_v17 = vld [vmem:[%s634_s13 + $0xd0] sm:$0xff] }
  0x1d   : > { %v193_v23 = vadd.f32 %v192_v18, %v191_v20  ;;  %v230_v20 = vsel %vm180_vm0, %v760_v12, 0.0 }
  0x1f   : > { %v195_v26 = vadd.f32 %v194_v21, %v193_v23  ;;  %v770_v21 = vld [vmem:[%s634_s13 + $0xd8] sm:$0xff] }
  0x21   : > { %v197_v29 = vadd.f32 %v196_v24, %v195_v26  ;;  %v232_v24 = vsel %vm180_vm0, %v765_v17, 0.0  ;;  %v775_v26 = vld [vmem:[%s634_s13 + $0xe0] sm:$0xff] }
  0x23   : > { %v199_v32 = vadd.f32 %v198_v27, %v197_v29  ;;  %v234_v29 = vsel %vm180_vm0, %v770_v21, 0.0 }
  0x25   : > { %v201_v35 = vadd.f32 %v200_v30, %v199_v32  ;;  %v780_v30 = vld [vmem:[%s634_s13 + $0xe8] sm:$0xff] }
  0x27   : > { %v203_v38 = vadd.f32 %v202_v33, %v201_v35  ;;  %v236_v33 = vsel %vm180_vm0, %v775_v26, 0.0  ;;  %v785_v35 = vld [vmem:[%s634_s13 + $0xf0] sm:$0xff] }
  0x29   : > { %v205_v41 = vadd.f32 %v204_v36, %v203_v38  ;;  %v238_v38 = vsel %vm180_vm0, %v780_v30, 0.0 }
  0x2b   : > { %v207_v44 = vadd.f32 %v206_v39, %v205_v41  ;;  %v790_v39 = vld [vmem:[%s634_s13 + $0xf8] sm:$0xff] }
  0x2d   : > { %v209_v47 = vadd.f32 %v208_v42, %v207_v44  ;;  %v240_v42 = vsel %vm180_vm0, %v785_v35, 0.0 }
  0x2f   : > { %v211_v50 = vadd.f32 %v210_v45, %v209_v47  ;;  %v242_v45 = vsel %vm180_vm0, %v790_v39, 0.0 }
  0x31   : > { %v213_v53 = vadd.f32 %v212_v48, %v211_v50 }
  0x33   : > { %v215_v56 = vadd.f32 %v214_v51, %v213_v53 }
  0x35   : > { %v217_v59 = vadd.f32 %v216_v54, %v215_v56 }
  0x37   : > { %v219_v62 = vadd.f32 %v218_v57, %v217_v59 }
  0x39   : > { %v221_v5 = vadd.f32 %v220_v60, %v219_v62 }
  0x3b   : > { %v223_v9 = vadd.f32 %v222_v63, %v221_v5 }
  0x3d   : > { %v225_v14 = vadd.f32 %v224_v6, %v223_v9 }
  0x3f   : > { %v227_v18 = vadd.f32 %v226_v11, %v225_v14 }
  0x41   : > { %v229_v23 = vadd.f32 %v228_v15, %v227_v18 }
  0x43   : > { %v231_v27 = vadd.f32 %v230_v20, %v229_v23 }
  0x45   : > { %v233_v32 = vadd.f32 %v232_v24, %v231_v27 }
  0x47   : > { %v235_v36 = vadd.f32 %v234_v29, %v233_v32 }
  0x49   : > { %v237_v41 = vadd.f32 %v236_v33, %v235_v36 }
  0x4b   : > { %v239_v44 = vadd.f32 %v238_v38, %v237_v41 }
  0x4d   : > { %v241_v47 = vadd.f32 %v240_v42, %v239_v44 }
  0x4f   : > { %v243_v48 = vadd.f32 %v242_v45, %v241_v47 }
  0x51   : > { %v244_v50 = vrot.slane %v243_v48, 4 }
  0x53   : > { %v245_v51 = vadd.f32 %v244_v50, %v243_v48 }
  0x55   : > { %v246_v53 = vrot.slane %v245_v51, 2 }
  0x57   : > { %v247_v54 = vadd.f32 %v246_v53, %v245_v51 }
  0x59   : > { %v248_v56 = vrot.slane %v247_v54, 1 }
  0x5b   : > { %v249_v57 = vadd.f32 %v248_v56, %v247_v54 }
  0x5d   : > { %v796_v59 = vmul.f32 0.00390625, %v249_v57 }
  0x5f   : > { %v800_v60 = vsub.f32 %v637_v0, %v796_v59  ;;  %v804_v62 = vsub.f32 %v640_v1, %v796_v59  ;;  %v808_v63 = vsub.f32 %v643_v2, %v796_v59  ;;  %v812_v5 = vsub.f32 %v646_v3, %v796_v59 }
  0x60   : > { %v816_v6 = vsub.f32 %v655_v7, %v796_v59  ;;  %v826_v2 = vsub.f32 %v660_v10, %v796_v59  ;;  %v832_v7 = vsub.f32 %v665_v13, %v796_v59  ;;  %v841_v10 = vsub.f32 %v670_v16, %v796_v59 }
  0x61   : > { %v283_v0 = vmul.f32 %v800_v60, %v800_v60  ;;  %v284_v9 = vmul.f32 %v804_v62, %v804_v62  ;;  %v285_v1 = vmul.f32 %v808_v63, %v808_v63  ;;  %v286_v3 = vmul.f32 %v812_v5, %v812_v5 }
  0x62   : > { %v287_v11 = vmul.f32 %v816_v6, %v816_v6  ;;  %v288_v23 = vmul.f32 %v826_v2, %v826_v2  ;;  %v848_v27 = vsub.f32 %v675_v19, %v796_v59  ;;  %v289_v29 = vmul.f32 %v832_v7, %v832_v7 }
  0x63   : > { %v315_v14 = vsel %vm180_vm0, %v283_v0, 0.0  ;;  %v316_v15 = vsel %vm180_vm0, %v284_v9, 0.0  ;;  %v318_v18 = vsel %vm180_vm0, %v285_v1, 0.0  ;;  %v320_v13 = vsel %vm180_vm0, %v286_v3, 0.0 }
  0x64   : > { %v317_v20 = vadd.f32 %v316_v15, %v315_v14  ;;  %v322_v32 = vsel %vm180_vm0, %v287_v11, 0.0  ;;  %v855_v16 = vsub.f32 %v680_v22, %v796_v59  ;;  %v290_v36 = vmul.f32 %v841_v10, %v841_v10 }
  0x65   : > { %v324_v38 = vsel %vm180_vm0, %v288_v23, 0.0  ;;  %v862_v19 = vsub.f32 %v685_v25, %v796_v59  ;;  %v291_v42 = vmul.f32 %v848_v27, %v848_v27  ;;  %v326_v44 = vsel %vm180_vm0, %v289_v29, 0.0 }
  0x66   : > { %v319_v24 = vadd.f32 %v318_v18, %v317_v20  ;;  %v869_v22 = vsub.f32 %v690_v28, %v796_v59  ;;  %v292_v47 = vmul.f32 %v855_v16, %v855_v16  ;;  %v328_v48 = vsel %vm180_vm0, %v290_v36, 0.0 }
  0x67   : > { %v876_v25 = vsub.f32 %v695_v31, %v796_v59  ;;  %v293_v51 = vmul.f32 %v862_v19, %v862_v19  ;;  %v330_v53 = vsel %vm180_vm0, %v291_v42, 0.0  ;;  %v883_v28 = vsub.f32 %v700_v34, %v796_v59 }
  0x68   : > { %v321_v33 = vadd.f32 %v320_v13, %v319_v24  ;;  %v294_v56 = vmul.f32 %v869_v22, %v869_v22  ;;  %v332_v57 = vsel %vm180_vm0, %v292_v47, 0.0  ;;  %v890_v31 = vsub.f32 %v705_v37, %v796_v59 }
  0x69   : > { %v295_v9 = vmul.f32 %v876_v25, %v876_v25  ;;  %v334_v1 = vsel %vm180_vm0, %v293_v51, 0.0  ;;  %v897_v34 = vsub.f32 %v710_v40, %v796_v59  ;;  %v296_v11 = vmul.f32 %v883_v28, %v883_v28 }
  0x6a   : > { %v323_v41 = vadd.f32 %v322_v32, %v321_v33  ;;  %v336_v14 = vsel %vm180_vm0, %v294_v56, 0.0  ;;  %v904_v37 = vsub.f32 %v715_v43, %v796_v59  ;;  %v297_v18 = vmul.f32 %v890_v31, %v890_v31 }
  0x6b   : > { %v338_v20 = vsel %vm180_vm0, %v295_v9, 0.0  ;;  %v911_v40 = vsub.f32 %v720_v46, %v796_v59  ;;  %v298_v13 = vmul.f32 %v897_v34, %v897_v34  ;;  %v340_v24 = vsel %vm180_vm0, %v296_v11, 0.0 }
  0x6c   : > { %v325_v45 = vadd.f32 %v324_v38, %v323_v41  ;;  %v918_v43 = vsub.f32 %v725_v49, %v796_v59  ;;  %v299_v32 = vmul.f32 %v904_v37, %v904_v37  ;;  %v342_v33 = vsel %vm180_vm0, %v297_v18, 0.0 }
  0x6d   : > { %v925_v46 = vsub.f32 %v730_v52, %v796_v59  ;;  %v300_v38 = vmul.f32 %v911_v40, %v911_v40  ;;  %v344_v41 = vsel %vm180_vm0, %v298_v13, 0.0  ;;  %v932_v49 = vsub.f32 %v735_v55, %v796_v59 }
  0x6e   : > { %v327_v50 = vadd.f32 %v326_v44, %v325_v45  ;;  %v301_v44 = vmul.f32 %v918_v43, %v918_v43  ;;  %v346_v45 = vsel %vm180_vm0, %v299_v32, 0.0  ;;  %v939_v52 = vsub.f32 %v740_v58, %v796_v59 }
  0x6f   : > { %v946_v55 = vsub.f32 %v745_v61, %v796_v59  ;;  %v953_v58 = vsub.f32 %v750_v4, %v796_v59  ;;  %v960_v61 = vsub.f32 %v755_v8, %v796_v59  ;;  %v967_v4 = vsub.f32 %v760_v12, %v796_v59 }
  0x70   : > { %v329_v54 = vadd.f32 %v328_v48, %v327_v50  ;;  %v302_v48 = vmul.f32 %v925_v46, %v925_v46  ;;  %v348_v50 = vsel %vm180_vm0, %v300_v38, 0.0  ;;  %v974_v8 = vsub.f32 %v765_v17, %v796_v59 }
  0x71   : > { %v981_v12 = vsub.f32 %v770_v21, %v796_v59  ;;  %v988_v17 = vsub.f32 %v775_v26, %v796_v59  ;;  %v995_v21 = vsub.f32 %v780_v30, %v796_v59  ;;  %v1002_v26 = vsub.f32 %v785_v35, %v796_v59 }
  0x72   : > { %v331_v0 = vadd.f32 %v330_v53, %v329_v54  ;;  %v303_v53 = vmul.f32 %v932_v49, %v932_v49  ;;  %v350_v54 = vsel %vm180_vm0, %v301_v44, 0.0  ;;  %v1009_v30 = vsub.f32 %v790_v39, %v796_v59 }
  0x73   : > { %v313_v35 = vmul.f32 %v1002_v26, %v1002_v26 }
  0x74   : > { %v333_v3 = vadd.f32 %v332_v57, %v331_v0  ;;  %v304_v57 = vmul.f32 %v939_v52, %v939_v52  ;;  %v352_v0 = vsel %vm180_vm0, %v302_v48, 0.0 }
  0x75   : > { %v374_v39 = vsel %vm180_vm0, %v313_v35, 0.0 }
  0x76   : > { %v335_v15 = vadd.f32 %v334_v1, %v333_v3  ;;  %v305_v1 = vmul.f32 %v946_v55, %v946_v55  ;;  %v354_v3 = vsel %vm180_vm0, %v303_v53, 0.0 }
  0x78   : > { %v337_v23 = vadd.f32 %v336_v14, %v335_v15  ;;  %v306_v14 = vmul.f32 %v953_v58, %v953_v58  ;;  %v356_v15 = vsel %vm180_vm0, %v304_v57, 0.0  ;;  %v314_v57 = vmul.f32 %v1009_v30, %v1009_v30 }
  0x7a   : > { %v339_v29 = vadd.f32 %v338_v20, %v337_v23  ;;  %v307_v20 = vmul.f32 %v960_v61, %v960_v61  ;;  %v358_v23 = vsel %vm180_vm0, %v305_v1, 0.0  ;;  %v376_v1 = vsel %vm180_vm0, %v314_v57, 0.0 }
  0x7c   : > { %v341_v36 = vadd.f32 %v340_v24, %v339_v29  ;;  %v308_v24 = vmul.f32 %v967_v4, %v967_v4  ;;  %v360_v29 = vsel %vm180_vm0, %v306_v14, 0.0 }
  0x7e   : > { %v343_v42 = vadd.f32 %v342_v33, %v341_v36  ;;  %v309_v33 = vmul.f32 %v974_v8, %v974_v8  ;;  %v362_v36 = vsel %vm180_vm0, %v307_v20, 0.0 }
  0x80   : > { %v345_v47 = vadd.f32 %v344_v41, %v343_v42  ;;  %v310_v41 = vmul.f32 %v981_v12, %v981_v12  ;;  %v364_v42 = vsel %vm180_vm0, %v308_v24, 0.0 }
  0x82   : > { %v347_v51 = vadd.f32 %v346_v45, %v345_v47  ;;  %v311_v45 = vmul.f32 %v988_v17, %v988_v17  ;;  %v366_v47 = vsel %vm180_vm0, %v309_v33, 0.0 }
  0x84   : > { %v349_v56 = vadd.f32 %v348_v50, %v347_v51  ;;  %v312_v50 = vmul.f32 %v995_v21, %v995_v21  ;;  %v368_v51 = vsel %vm180_vm0, %v310_v41, 0.0 }
  0x86   : > { %v351_v9 = vadd.f32 %v350_v54, %v349_v56  ;;  %v370_v54 = vsel %vm180_vm0, %v311_v45, 0.0 }
  0x88   : > { %v353_v11 = vadd.f32 %v352_v0, %v351_v9  ;;  %v372_v0 = vsel %vm180_vm0, %v312_v50, 0.0 }
  0x8a   : > { %v355_v18 = vadd.f32 %v354_v3, %v353_v11 }
  0x8c   : > { %v357_v13 = vadd.f32 %v356_v15, %v355_v18 }
  0x8e   : > { %v359_v32 = vadd.f32 %v358_v23, %v357_v13 }
  0x90   : > { %v361_v38 = vadd.f32 %v360_v29, %v359_v32 }
  0x92   : > { %v363_v44 = vadd.f32 %v362_v36, %v361_v38 }
  0x94   : > { %v365_v48 = vadd.f32 %v364_v42, %v363_v44 }
  0x96   : > { %v367_v53 = vadd.f32 %v366_v47, %v365_v48 }
  0x98   : > { %v369_v56 = vadd.f32 %v368_v51, %v367_v53 }
  0x9a   : > { %v371_v9 = vadd.f32 %v370_v54, %v369_v56 }
  0x9c   : > { %v373_v59 = vadd.f32 %v372_v0, %v371_v9 }
  0x9e   : > { %v375_v3 = vadd.f32 %v374_v39, %v373_v59 }
  0xa0   : > { %v377_v11 = vadd.f32 %v376_v1, %v375_v3 }
  0xa2   : > { %v378_v14 = vrot.slane %v377_v11, 4 }
  0xa4   : > { %v379_v15 = vadd.f32 %v378_v14, %v377_v11 }
  0xa6   : > { %v380_v18 = vrot.slane %v379_v15, 2 }
  0xa8   : > { %v381_v20 = vadd.f32 %v380_v18, %v379_v15 }
  0xaa   : > { %v382_v23 = vrot.slane %v381_v20, 1 }
  0xac   : > { %v383_v13 = vadd.f32 %v382_v23, %v381_v20 }
  0xae   : > { %v384_v24 = vmul.f32 0.003921569, %v383_v13 }
  0xb0   : > { %v385_v29 = vadd.f32 1e-05, %v384_v24 }
  0xb2   : > { %572 = vrsqrt.f32 %v385_v29 }
  0xbc   : > { %v573_v32 = vpop.eup %572 }
  0xbd   : > { %v387_v33 = vmul.f32 0.5, %v573_v32 }
  0xbf   : > { %v388_v36 = vmul.f32 %v387_v33, %v800_v60  ;;  %v389_v38 = vmul.f32 %v387_v33, %v804_v62  ;;  %v390_v41 = vmul.f32 %v387_v33, %v808_v63  ;;  %v391_v42 = vmul.f32 %v387_v33, %v812_v5 }
  0xc0   : > { %v392_v44 = vmul.f32 %v387_v33, %v816_v6  ;;  %v393_v45 = vmul.f32 %v387_v33, %v826_v2  ;;  %v394_v47 = vmul.f32 %v387_v33, %v832_v7  ;;  %v395_v48 = vmul.f32 %v387_v33, %v841_v10 }
  0xc1   : > { %420 = vst.msk [vmem:[%s1027_s16] sm:$0xff] %vm180_vm0, %v388_v36  ;;  %421 = vst.msk [vmem:[%s1027_s16 + $0x8] sm:$0xff] %vm180_vm0, %v389_v38  ;;  %v396_v60 = vmul.f32 %v387_v33, %v848_v27  ;;  %v397_v62 = vmul.f32 %v387_v33, %v855_v16  ;;  %v398_v63 = vmul.f32 %v387_v33, %v862_v19 }
  0xc2   : > { %422 = vst.msk [vmem:[%s1027_s16 + $0x10] sm:$0xff] %vm180_vm0, %v390_v41  ;;  %423 = vst.msk [vmem:[%s1027_s16 + $0x18] sm:$0xff] %vm180_vm0, %v391_v42  ;;  %v399_v5 = vmul.f32 %v387_v33, %v869_v22  ;;  %v400_v6 = vmul.f32 %v387_v33, %v876_v25  ;;  %v401_v2 = vmul.f32 %v387_v33, %v883_v28 }
  0xc3   : > { %424 = vst.msk [vmem:[%s1027_s16 + $0x20] sm:$0xff] %vm180_vm0, %v392_v44  ;;  %425 = vst.msk [vmem:[%s1027_s16 + $0x28] sm:$0xff] %vm180_vm0, %v393_v45  ;;  %v402_v7 = vmul.f32 %v387_v33, %v890_v31  ;;  %v403_v10 = vmul.f32 %v387_v33, %v897_v34  ;;  %v404_v27 = vmul.f32 %v387_v33, %v904_v37 }
  0xc4   : > { %426 = vst.msk [vmem:[%s1027_s16 + $0x30] sm:$0xff] %vm180_vm0, %v394_v47  ;;  %427 = vst.msk [vmem:[%s1027_s16 + $0x38] sm:$0xff] %vm180_vm0, %v395_v48  ;;  %v405_v16 = vmul.f32 %v387_v33, %v911_v40  ;;  %v406_v19 = vmul.f32 %v387_v33, %v918_v43  ;;  %v407_v22 = vmul.f32 %v387_v33, %v925_v46 }
  0xc5   : > { %428 = vst.msk [vmem:[%s1027_s16 + $0x40] sm:$0xff] %vm180_vm0, %v396_v60  ;;  %429 = vst.msk [vmem:[%s1027_s16 + $0x48] sm:$0xff] %vm180_vm0, %v397_v62  ;;  %v408_v25 = vmul.f32 %v387_v33, %v932_v49  ;;  %v409_v28 = vmul.f32 %v387_v33, %v939_v52  ;;  %v410_v31 = vmul.f32 %v387_v33, %v946_v55 }
  0xc6   : > { %430 = vst.msk [vmem:[%s1027_s16 + $0x50] sm:$0xff] %vm180_vm0, %v398_v63  ;;  %431 = vst.msk [vmem:[%s1027_s16 + $0x58] sm:$0xff] %vm180_vm0, %v399_v5  ;;  %v411_v34 = vmul.f32 %v387_v33, %v953_v58  ;;  %v412_v37 = vmul.f32 %v387_v33, %v960_v61  ;;  %v413_v40 = vmul.f32 %v387_v33, %v967_v4 }
  0xc7   : > { %432 = vst.msk [vmem:[%s1027_s16 + $0x60] sm:$0xff] %vm180_vm0, %v400_v6  ;;  %433 = vst.msk [vmem:[%s1027_s16 + $0x68] sm:$0xff] %vm180_vm0, %v401_v2  ;;  %v414_v43 = vmul.f32 %v387_v33, %v974_v8  ;;  %v415_v46 = vmul.f32 %v387_v33, %v981_v12  ;;  %v416_v49 = vmul.f32 %v387_v33, %v988_v17 }
  0xc8   : > { %434 = vst.msk [vmem:[%s1027_s16 + $0x70] sm:$0xff] %vm180_vm0, %v402_v7  ;;  %435 = vst.msk [vmem:[%s1027_s16 + $0x78] sm:$0xff] %vm180_vm0, %v403_v10  ;;  %v417_v52 = vmul.f32 %v387_v33, %v995_v21  ;;  %v418_v55 = vmul.f32 %v387_v33, %v1002_v26  ;;  %v419_v58 = vmul.f32 %v387_v33, %v1009_v30 }
  0xc9   : > { %436 = vst.msk [vmem:[%s1027_s16 + $0x80] sm:$0xff] %vm180_vm0, %v404_v27  ;;  %437 = vst.msk [vmem:[%s1027_s16 + $0x88] sm:$0xff] %vm180_vm0, %v405_v16 }
  0xca   : > { %438 = vst.msk [vmem:[%s1027_s16 + $0x90] sm:$0xff] %vm180_vm0, %v406_v19  ;;  %439 = vst.msk [vmem:[%s1027_s16 + $0x98] sm:$0xff] %vm180_vm0, %v407_v22 }
  0xcb   : > { %440 = vst.msk [vmem:[%s1027_s16 + $0xa0] sm:$0xff] %vm180_vm0, %v408_v25  ;;  %441 = vst.msk [vmem:[%s1027_s16 + $0xa8] sm:$0xff] %vm180_vm0, %v409_v28 }
  0xcc   : > { %442 = vst.msk [vmem:[%s1027_s16 + $0xb0] sm:$0xff] %vm180_vm0, %v410_v31  ;;  %443 = vst.msk [vmem:[%s1027_s16 + $0xb8] sm:$0xff] %vm180_vm0, %v411_v34 }
  0xcd   : > { %444 = vst.msk [vmem:[%s1027_s16 + $0xc0] sm:$0xff] %vm180_vm0, %v412_v37  ;;  %445 = vst.msk [vmem:[%s1027_s16 + $0xc8] sm:$0xff] %vm180_vm0, %v413_v40 }
  0xce   : > { %446 = vst.msk [vmem:[%s1027_s16 + $0xd0] sm:$0xff] %vm180_vm0, %v414_v43  ;;  %447 = vst.msk [vmem:[%s1027_s16 + $0xd8] sm:$0xff] %vm180_vm0, %v415_v46 }
  0xcf   : > { %448 = vst.msk [vmem:[%s1027_s16 + $0xe0] sm:$0xff] %vm180_vm0, %v416_v49  ;;  %449 = vst.msk [vmem:[%s1027_s16 + $0xe8] sm:$0xff] %vm180_vm0, %v417_v52 }
  0xd0   : > { %450 = vst.msk [vmem:[%s1027_s16 + $0xf0] sm:$0xff] %vm180_vm0, %v418_v55  ;;  %451 = vst.msk [vmem:[%s1027_s16 + $0xf8] sm:$0xff] %vm180_vm0, %v419_v58 }
  0xd1 PF: > { %s11_s8 = sadd.s32 1, %s596_s8   ;;  %s1136_s6 = smov %s592_s7 }
  0xd2   : > { %p8_p5 = scmp.ge.s32.totalorder %s11_s8, 4   ;;  %s1137_s7 = smov %s1139_s9 }
  0xd4   :  { %10 = sbr.rel (!%p8_p5) target bundleno = 2 (0x2), region = 54 }

</bundles_post_ra>
